<compile_context>
chip_gen: v5e
topology: v5e:2x2
jax: 0.10.0
libtpu: 0.0.40
codegen_flags: <defaults>
</compile_context>

<pallas_src>
import functools

import jax
import jax.numpy as jnp
import numpy as np
from jax import lax
from jax.experimental import pallas as pl
from jax.experimental.pallas import tpu as pltpu

_PDIST_EPS = 1e-12   # pdist_torch clamp
_Z_EPS = 1e-6        # softmax_weights denominator epsilon
_COS_EPS = 1e-8      # nn.CosineSimilarity eps
_DIMS = (((1,), (1,)), ((), ()))  # contract last dims: (2B,D)x(B,D) -> (2B,B)


def _triplet_adp_kernel(ap_ref, n_ref, w_ref, out_ref, *, gamma, batch):
    f32 = jnp.float32
    x = ap_ref[...].astype(f32)       # (2B, D) = [anchor; positive] stacked
    n = n_ref[0].astype(f32)          # (B, D)   negative set for this grid step
    w = w_ref[0].astype(f32)          # (1, B)   weight_mask column for this set

    a = x[:batch]                     # (B, D) anchor rows (sublane-aligned slice)
    p = x[batch:]                     # (B, D) positive rows

    # ---- loss_ap: column-wise cosine similarity (CosineSimilarity(dim=0)) ----
    num = jnp.sum(a * p, axis=0, keepdims=True)                       # (1, D)
    den = jnp.sqrt(jnp.sum(a * a, axis=0, keepdims=True)) * \
          jnp.sqrt(jnp.sum(p * p, axis=0, keepdims=True))             # (1, D)
    cos = num / jnp.maximum(den, _COS_EPS)
    ap_term = jnp.sum(cos, axis=1, keepdims=True) / float(batch)      # (1, 1)

    # ---- (2B x B) distance matrix via squared-norm expansion + one MXU dot ----
    x2 = jnp.sum(x * x, axis=1, keepdims=True)                        # (2B, 1)
    n2 = jnp.sum(n * n, axis=1)[None, :]                              # (1, B)
    xn = lax.dot_general(x, n, _DIMS, precision=lax.Precision.HIGHEST,
                         preferred_element_type=f32)                  # (2B, B)
    dist = jnp.sqrt(jnp.maximum(x2 + n2 - 2.0 * xn, _PDIST_EPS))      # (2B, B)
    # rows [:B]  -> anchor->neg distances, rows [B:] -> positive->neg distances

    # pair_similarity(ones, w) / pair_similarity(ones, 1-w): row-constant masks
    is_pos = (w == 1.0).astype(f32)                                   # (1, B)
    is_neg = ((1.0 - w) == 1.0).astype(f32)                           # (1, B)

    def weighted_sum(sign, mask):
        # sum(dist * softmax_weights(sign*dist, mask), axis=1)
        sd = sign * dist
        max_v = jnp.max(sd * mask, axis=1, keepdims=True)
        e = jnp.exp(sd - max_v) * mask
        z = jnp.sum(e, axis=1, keepdims=True) + _Z_EPS
        return jnp.sum(dist * e, axis=1, keepdims=True) / z           # (2B, 1)

    furthest_pos = weighted_sum(1.0, is_pos)     # rows: [A..., P...]
    closest_neg = weighted_sum(-1.0, is_neg)

    # SoftMarginLoss with all-ones targets: mean(log(1 + exp(-x)))
    sm = jnp.log1p(jnp.exp(-gamma * (closest_neg - furthest_pos)))    # (2B, 1)
    l2an = jnp.mean(sm[:batch], keepdims=True)                        # (1, 1)
    l2pn = jnp.mean(sm[batch:], keepdims=True)                        # (1, 1)

    per_i = jnp.maximum(ap_term + l2pn + l2an, 0.0) * 0.5             # (1, 1)
    out_ref[...] = jnp.broadcast_to(per_i, out_ref.shape).astype(out_ref.dtype)


def triplet_loss_adp_forward(anchor, positive, weight_mask, neglist, *,
                             gamma=1.0):
    """Pallas TPU implementation of TripletLoss_ADP.forward (defaults:
    square=0, normalize_feature=False). Returns a scalar loss."""
    batch, feat = anchor.shape
    multi = len(neglist)

    # Glue reshapes (tiny, not the hot path): stack anchor/positive as a single
    # resident (2B, D) matrix, negatives as (M, B, D), and present the weight
    # mask as (M, 1, B) so each grid step gets its column.
    ap = jnp.concatenate([anchor, positive], axis=0)         # (2B, D)
    negs = jnp.stack(neglist, axis=0)                        # (M, B, D)
    w_t = jnp.transpose(weight_mask)[:, None, :]             # (M, 1, B)

    kernel = functools.partial(_triplet_adp_kernel,
                               gamma=float(gamma), batch=int(batch))

    partials = pl.pallas_call(
        kernel,
        out_shape=jax.ShapeDtypeStruct((multi, 1, 128), jnp.float32),
        grid=(multi,),
        in_specs=[
            pl.BlockSpec((2 * batch, feat), lambda i: (0, 0)),    # [a; p] (resident)
            pl.BlockSpec((1, batch, feat), lambda i: (i, 0, 0)),  # neg set i (pipelined)
            pl.BlockSpec((1, 1, batch), lambda i: (i, 0, 0)),     # mask column i
        ],
        out_specs=pl.BlockSpec((1, 1, 128), lambda i: (i, 0, 0)),
        compiler_params=pltpu.CompilerParams(
            dimension_semantics=("parallel",)),
    )(ap, negs, w_t)

    # Tiny final reduction over the M per-set partials (kept outside so the
    # grid axis can be split across TensorCores on v7x).
    return jnp.sum(partials[:, 0, 0])


def _reference_forward(anchor, positive, weight_mask, neglist, gamma):
    """Plain-JAX mirror of the PyTorch forward (square=0, no normalization)."""
    batch = anchor.shape[0]

    num = jnp.sum(anchor * positive, axis=0)
    den = jnp.sqrt(jnp.sum(anchor * anchor, axis=0)) * \
          jnp.sqrt(jnp.sum(positive * positive, axis=0))
    loss_ap = num / jnp.maximum(den, _COS_EPS)               # (D,)

    def pdist(x, y):
        x2 = jnp.sum(x * x, axis=1, keepdims=True)
        y2 = jnp.sum(y * y, axis=1)[None, :]
        xy = lax.dot_general(x, y, _DIMS, precision=lax.Precision.HIGHEST,
                             preferred_element_type=jnp.float32)
        return jnp.sqrt(jnp.maximum(x2 + y2 - 2.0 * xy, _PDIST_EPS))

    def softmax_weights(dist, mask):
        max_v = jnp.max(dist * mask, axis=1, keepdims=True)
        diff = dist - max_v
        z = jnp.sum(jnp.exp(diff) * mask, axis=1, keepdims=True) + _Z_EPS
        return jnp.exp(diff) * mask / z

    l2an, l2pn = [], []
    for i, neg in enumerate(neglist):
        w = weight_mask[:, i]
        is_pos = (w == 1.0).astype(jnp.float32)[None, :]
        is_neg = ((1.0 - w) == 1.0).astype(jnp.float32)[None, :]
        an = pdist(anchor, neg)
        pn = pdist(positive, neg)
        a_fp = jnp.sum(an * softmax_weights(an, is_pos), axis=1)
        a_cn = jnp.sum(an * softmax_weights(-an, is_neg), axis=1)
        p_fp = jnp.sum(pn * softmax_weights(pn, is_pos), axis=1)
        p_cn = jnp.sum(pn * softmax_weights(-pn, is_neg), axis=1)
        l2an.append(jnp.mean(jnp.log(1.0 + jnp.exp(-gamma * (a_cn - a_fp)))))
        l2pn.append(jnp.mean(jnp.log(1.0 + jnp.exp(-gamma * (p_cn - p_fp)))))

    loss_apn = jnp.sum(loss_ap) / batch + jnp.array(l2pn) + jnp.array(l2an)
    return jnp.sum(jnp.maximum(loss_apn, 0.0)) / 2.0


if __name__ == "__main__":
    # Module "parameters" (constructor args) — deterministic, in-script.
    gamma = 1.0
    batch, feat, multi = 8, 32, 4

    key = jax.random.PRNGKey(0)
    k_a, k_p, k_w, *k_negs = jax.random.split(key, 3 + multi)

    anchor = jax.random.normal(k_a, (batch, feat), dtype=jnp.float32)
    positive = jax.random.normal(k_p, (batch, feat), dtype=jnp.float32)
    # binary mask, as implied by pair_similarity against a ones label vector
    weight_mask = jax.random.bernoulli(k_w, 0.5, (batch, multi)).astype(jnp.float32)
    neglist = [jax.random.normal(k, (batch, feat), dtype=jnp.float32)
               for k in k_negs]

    out = triplet_loss_adp_forward(anchor, positive, weight_mask, neglist,
                                   gamma=gamma)
    out = jax.block_until_ready(out)

    ref = jax.block_until_ready(
        _reference_forward(anchor, positive, weight_mask, neglist, gamma))

    assert np.allclose(np.asarray(out), np.asarray(ref), rtol=1e-5, atol=1e-5), \
        f"mismatch: kernel={out} ref={ref}"
    print("KERNEL_OK")
</pallas_src>

<mosaic_0001>
module attributes {stable_mosaic.version = 11 : i64} {
  func.func @_triplet_adp_kernel(%arg0: i32, %arg1: memref<16x32xf32, #tpu.memory_space<vmem>>, %arg2: memref<1x8x32xf32, #tpu.memory_space<vmem>>, %arg3: memref<1x1x8xf32, #tpu.memory_space<vmem>>, %arg4: memref<1x1x128xf32, #tpu.memory_space<vmem>>) attributes {dimension_semantics = [#tpu.dimension_semantics<parallel>], iteration_bounds = array<i64: 4>, scalar_prefetch = 0 : i64, scratch_operands = 0 : i64, tpu.core_type = #tpu.core_type<tc>, window_params = [{pipeline_mode = #tpu.pipeline_mode<synchronous>, transform_indices = @transform_0, window_bounds = array<i64: 16, 32>}, {transform_indices = @transform_1, window_bounds = array<i64: 1, 8, 32>}, {transform_indices = @transform_2, window_bounds = array<i64: 1, 1, 8>}, {transform_indices = @transform_3, window_bounds = array<i64: 1, 1, 128>}]} {
    %c0 = arith.constant 0 : index
    %c0_0 = arith.constant 0 : index
    %0 = vector.load %arg1[%c0, %c0_0] : memref<16x32xf32, #tpu.memory_space<vmem>>, vector<16x32xf32>
    %c0_1 = arith.constant 0 : index
    %c0_2 = arith.constant 0 : index
    %c0_3 = arith.constant 0 : index
    %1 = vector.load %arg2[%c0_1, %c0_2, %c0_3] : memref<1x8x32xf32, #tpu.memory_space<vmem>>, vector<1x8x32xf32>
    %2 = vector.shape_cast %1 : vector<1x8x32xf32> to vector<8x32xf32>
    %c0_4 = arith.constant 0 : index
    %c0_5 = arith.constant 0 : index
    %c0_6 = arith.constant 0 : index
    %3 = vector.load %arg3[%c0_4, %c0_5, %c0_6] : memref<1x1x8xf32, #tpu.memory_space<vmem>>, vector<1x1x8xf32>
    %4 = vector.shape_cast %3 : vector<1x1x8xf32> to vector<1x8xf32>
    %5 = vector.extract_strided_slice %0 {offsets = [0, 0], sizes = [8, 32], strides = [1, 1]} : vector<16x32xf32> to vector<8x32xf32>
    %6 = vector.extract_strided_slice %0 {offsets = [8, 0], sizes = [8, 32], strides = [1, 1]} : vector<16x32xf32> to vector<8x32xf32>
    %7 = arith.mulf %5, %6 : vector<8x32xf32>
    %cst = arith.constant dense<0.000000e+00> : vector<32xf32>
    %8 = vector.multi_reduction <add>, %7, %cst [0] : vector<8x32xf32> to vector<32xf32>
    %9 = vector.shape_cast %8 : vector<32xf32> to vector<1x32xf32>
    %10 = arith.mulf %5, %5 : vector<8x32xf32>
    %cst_7 = arith.constant dense<0.000000e+00> : vector<32xf32>
    %11 = vector.multi_reduction <add>, %10, %cst_7 [0] : vector<8x32xf32> to vector<32xf32>
    %12 = vector.shape_cast %11 : vector<32xf32> to vector<1x32xf32>
    %13 = math.sqrt %12 : vector<1x32xf32>
    %14 = arith.mulf %6, %6 : vector<8x32xf32>
    %cst_8 = arith.constant dense<0.000000e+00> : vector<32xf32>
    %15 = vector.multi_reduction <add>, %14, %cst_8 [0] : vector<8x32xf32> to vector<32xf32>
    %16 = vector.shape_cast %15 : vector<32xf32> to vector<1x32xf32>
    %17 = math.sqrt %16 : vector<1x32xf32>
    %18 = arith.mulf %13, %17 : vector<1x32xf32>
    %cst_9 = arith.constant 9.99999993E-9 : f32
    %19 = vector.broadcast %cst_9 : f32 to vector<1x32xf32>
    %20 = arith.maximumf %18, %19 : vector<1x32xf32>
    %21 = arith.divf %9, %20 : vector<1x32xf32>
    %cst_10 = arith.constant dense<0.000000e+00> : vector<1xf32>
    %22 = vector.multi_reduction <add>, %21, %cst_10 [1] : vector<1x32xf32> to vector<1xf32>
    %23 = vector.shape_cast %22 : vector<1xf32> to vector<1x1xf32>
    %cst_11 = arith.constant 8.000000e+00 : f32
    %24 = vector.broadcast %cst_11 : f32 to vector<1x1xf32>
    %25 = arith.divf %23, %24 : vector<1x1xf32>
    %26 = arith.mulf %0, %0 : vector<16x32xf32>
    %cst_12 = arith.constant dense<0.000000e+00> : vector<16xf32>
    %27 = vector.multi_reduction <add>, %26, %cst_12 [1] : vector<16x32xf32> to vector<16xf32>
    %28 = vector.shape_cast %27 : vector<16xf32> to vector<16x1xf32>
    %29 = arith.mulf %2, %2 : vector<8x32xf32>
    %cst_13 = arith.constant dense<0.000000e+00> : vector<8xf32>
    %30 = vector.multi_reduction <add>, %29, %cst_13 [1] : vector<8x32xf32> to vector<8xf32>
    %31 = vector.shape_cast %30 : vector<8xf32> to vector<1x8xf32>
    %cst_14 = arith.constant dense<0.000000e+00> : vector<16x8xf32>
    %32 = tpu.matmul %0, %2, %cst_14 {dimension_numbers = #tpu.dot_dimension_numbers<[1], [1], [0], [0], [0, 0, 1, 0], [], []>, precision = #tpu.contract_precision<fp32>} : vector<16x32xf32>, vector<8x32xf32>, vector<16x8xf32> -> vector<16x8xf32>
    %33 = vector.broadcast %28 : vector<16x1xf32> to vector<16x8xf32>
    %34 = vector.broadcast %31 : vector<1x8xf32> to vector<16x8xf32>
    %35 = arith.addf %33, %34 : vector<16x8xf32>
    %cst_15 = arith.constant 2.000000e+00 : f32
    %36 = vector.broadcast %cst_15 : f32 to vector<16x8xf32>
    %37 = arith.mulf %36, %32 : vector<16x8xf32>
    %38 = arith.subf %35, %37 : vector<16x8xf32>
    %cst_16 = arith.constant 9.99999996E-13 : f32
    %39 = vector.broadcast %cst_16 : f32 to vector<16x8xf32>
    %40 = arith.maximumf %38, %39 : vector<16x8xf32>
    %41 = math.sqrt %40 : vector<16x8xf32>
    %cst_17 = arith.constant 1.000000e+00 : f32
    %42 = vector.broadcast %cst_17 : f32 to vector<1x8xf32>
    %43 = arith.cmpf oeq, %4, %42 : vector<1x8xf32>
    %44 = arith.extui %43 : vector<1x8xi1> to vector<1x8xi32>
    %45 = arith.sitofp %44 : vector<1x8xi32> to vector<1x8xf32>
    %cst_18 = arith.constant 1.000000e+00 : f32
    %46 = vector.broadcast %cst_18 : f32 to vector<1x8xf32>
    %47 = arith.subf %46, %4 : vector<1x8xf32>
    %cst_19 = arith.constant 1.000000e+00 : f32
    %48 = vector.broadcast %cst_19 : f32 to vector<1x8xf32>
    %49 = arith.cmpf oeq, %47, %48 : vector<1x8xf32>
    %50 = arith.extui %49 : vector<1x8xi1> to vector<1x8xi32>
    %51 = arith.sitofp %50 : vector<1x8xi32> to vector<1x8xf32>
    %cst_20 = arith.constant 1.000000e+00 : f32
    %52 = vector.broadcast %cst_20 : f32 to vector<16x8xf32>
    %53 = arith.mulf %52, %41 : vector<16x8xf32>
    %54 = vector.broadcast %45 : vector<1x8xf32> to vector<16x8xf32>
    %55 = arith.mulf %53, %54 : vector<16x8xf32>
    %cst_21 = arith.constant dense<0xFF800000> : vector<16xf32>
    %56 = vector.multi_reduction <maximumf>, %55, %cst_21 [1] : vector<16x8xf32> to vector<16xf32>
    %57 = vector.shape_cast %56 : vector<16xf32> to vector<16x1xf32>
    %58 = vector.broadcast %57 : vector<16x1xf32> to vector<16x8xf32>
    %59 = arith.subf %53, %58 : vector<16x8xf32>
    %60 = math.exp %59 : vector<16x8xf32>
    %61 = vector.broadcast %45 : vector<1x8xf32> to vector<16x8xf32>
    %62 = arith.mulf %60, %61 : vector<16x8xf32>
    %cst_22 = arith.constant dense<0.000000e+00> : vector<16xf32>
    %63 = vector.multi_reduction <add>, %62, %cst_22 [1] : vector<16x8xf32> to vector<16xf32>
    %64 = vector.shape_cast %63 : vector<16xf32> to vector<16x1xf32>
    %cst_23 = arith.constant 9.99999997E-7 : f32
    %65 = vector.broadcast %cst_23 : f32 to vector<16x1xf32>
    %66 = arith.addf %64, %65 : vector<16x1xf32>
    %67 = arith.mulf %41, %62 : vector<16x8xf32>
    %cst_24 = arith.constant dense<0.000000e+00> : vector<16xf32>
    %68 = vector.multi_reduction <add>, %67, %cst_24 [1] : vector<16x8xf32> to vector<16xf32>
    %69 = vector.shape_cast %68 : vector<16xf32> to vector<16x1xf32>
    %70 = arith.divf %69, %66 : vector<16x1xf32>
    %cst_25 = arith.constant -1.000000e+00 : f32
    %71 = vector.broadcast %cst_25 : f32 to vector<16x8xf32>
    %72 = arith.mulf %71, %41 : vector<16x8xf32>
    %73 = vector.broadcast %51 : vector<1x8xf32> to vector<16x8xf32>
    %74 = arith.mulf %72, %73 : vector<16x8xf32>
    %cst_26 = arith.constant dense<0xFF800000> : vector<16xf32>
    %75 = vector.multi_reduction <maximumf>, %74, %cst_26 [1] : vector<16x8xf32> to vector<16xf32>
    %76 = vector.shape_cast %75 : vector<16xf32> to vector<16x1xf32>
    %77 = vector.broadcast %76 : vector<16x1xf32> to vector<16x8xf32>
    %78 = arith.subf %72, %77 : vector<16x8xf32>
    %79 = math.exp %78 : vector<16x8xf32>
    %80 = vector.broadcast %51 : vector<1x8xf32> to vector<16x8xf32>
    %81 = arith.mulf %79, %80 : vector<16x8xf32>
    %cst_27 = arith.constant dense<0.000000e+00> : vector<16xf32>
    %82 = vector.multi_reduction <add>, %81, %cst_27 [1] : vector<16x8xf32> to vector<16xf32>
    %83 = vector.shape_cast %82 : vector<16xf32> to vector<16x1xf32>
    %cst_28 = arith.constant 9.99999997E-7 : f32
    %84 = vector.broadcast %cst_28 : f32 to vector<16x1xf32>
    %85 = arith.addf %83, %84 : vector<16x1xf32>
    %86 = arith.mulf %41, %81 : vector<16x8xf32>
    %cst_29 = arith.constant dense<0.000000e+00> : vector<16xf32>
    %87 = vector.multi_reduction <add>, %86, %cst_29 [1] : vector<16x8xf32> to vector<16xf32>
    %88 = vector.shape_cast %87 : vector<16xf32> to vector<16x1xf32>
    %89 = arith.divf %88, %85 : vector<16x1xf32>
    %90 = arith.subf %89, %70 : vector<16x1xf32>
    %cst_30 = arith.constant -1.000000e+00 : f32
    %91 = vector.broadcast %cst_30 : f32 to vector<16x1xf32>
    %92 = arith.mulf %91, %90 : vector<16x1xf32>
    %93 = math.exp %92 : vector<16x1xf32>
    %94 = math.log1p %93 : vector<16x1xf32>
    %95 = vector.extract_strided_slice %94 {offsets = [0, 0], sizes = [8, 1], strides = [1, 1]} : vector<16x1xf32> to vector<8x1xf32>
    %96 = vector.shape_cast %95 : vector<8x1xf32> to vector<1x8x1xf32>
    %cst_31 = arith.constant dense<0.000000e+00> : vector<1xf32>
    %97 = vector.multi_reduction <add>, %96, %cst_31 [1, 2] : vector<1x8x1xf32> to vector<1xf32>
    %98 = vector.shape_cast %97 : vector<1xf32> to vector<1x1x1xf32>
    %99 = vector.extract %98[0, 0, 0] : f32 from vector<1x1x1xf32>
    %100 = vector.broadcast %99 : f32 to vector<1x1xf32>
    %cst_32 = arith.constant 8.000000e+00 : f32
    %101 = vector.broadcast %cst_32 : f32 to vector<1x1xf32>
    %102 = arith.divf %100, %101 : vector<1x1xf32>
    %103 = vector.extract_strided_slice %94 {offsets = [8, 0], sizes = [8, 1], strides = [1, 1]} : vector<16x1xf32> to vector<8x1xf32>
    %104 = vector.shape_cast %103 : vector<8x1xf32> to vector<1x8x1xf32>
    %cst_33 = arith.constant dense<0.000000e+00> : vector<1xf32>
    %105 = vector.multi_reduction <add>, %104, %cst_33 [1, 2] : vector<1x8x1xf32> to vector<1xf32>
    %106 = vector.shape_cast %105 : vector<1xf32> to vector<1x1x1xf32>
    %107 = vector.extract %106[0, 0, 0] : f32 from vector<1x1x1xf32>
    %108 = vector.broadcast %107 : f32 to vector<1x1xf32>
    %cst_34 = arith.constant 8.000000e+00 : f32
    %109 = vector.broadcast %cst_34 : f32 to vector<1x1xf32>
    %110 = arith.divf %108, %109 : vector<1x1xf32>
    %111 = arith.addf %25, %110 : vector<1x1xf32>
    %112 = arith.addf %111, %102 : vector<1x1xf32>
    %cst_35 = arith.constant 0.000000e+00 : f32
    %113 = vector.broadcast %cst_35 : f32 to vector<1x1xf32>
    %114 = arith.maximumf %112, %113 : vector<1x1xf32>
    %cst_36 = arith.constant 5.000000e-01 : f32
    %115 = vector.broadcast %cst_36 : f32 to vector<1x1xf32>
    %116 = arith.mulf %114, %115 : vector<1x1xf32>
    %117 = vector.shape_cast %116 : vector<1x1xf32> to vector<1x1x1xf32>
    %118 = vector.broadcast %117 : vector<1x1x1xf32> to vector<1x1x128xf32>
    %c0_37 = arith.constant 0 : index
    %c0_38 = arith.constant 0 : index
    %c0_39 = arith.constant 0 : index
    %119 = vector.load %arg4[%c0_37, %c0_38, %c0_39] : memref<1x1x128xf32, #tpu.memory_space<vmem>>, vector<1x1x128xf32>
    tpu.vector_store %arg4[%c0_37, %c0_38, %c0_39], %118 {strides = array<i32>} : memref<1x1x128xf32, #tpu.memory_space<vmem>>, vector<1x1x128xf32>,
    return
  }
  func.func @transform_0(%arg0: i32) -> (i32, i32) {
    %c0_i32 = arith.constant 0 : i32
    %c0_i32_0 = arith.constant 0 : i32
    %c0_i32_1 = arith.constant 0 : i32
    return %c0_i32, %c0_i32_0 : i32, i32
  }
  func.func @transform_1(%arg0: i32) -> (i32, i32, i32) {
    %c0_i32 = arith.constant 0 : i32
    %c0_i32_0 = arith.constant 0 : i32
    %c0_i32_1 = arith.constant 0 : i32
    return %arg0, %c0_i32, %c0_i32_0 : i32, i32, i32
  }
  func.func @transform_2(%arg0: i32) -> (i32, i32, i32) {
    %c0_i32 = arith.constant 0 : i32
    %c0_i32_0 = arith.constant 0 : i32
    %c0_i32_1 = arith.constant 0 : i32
    return %arg0, %c0_i32, %c0_i32_0 : i32, i32, i32
  }
  func.func @transform_3(%arg0: i32) -> (i32, i32, i32) {
    %c0_i32 = arith.constant 0 : i32
    %c0_i32_0 = arith.constant 0 : i32
    %c0_i32_1 = arith.constant 0 : i32
    return %arg0, %c0_i32, %c0_i32_0 : i32, i32, i32
  }
}

</mosaic_0001>

<bundles_post_ra>
// kernel: tpu_custom_call.1
= control target key start
LH: loop header
LB: loop body
LE: loop exit
PB: predicated region body
PF: predicated region fallthrough
CT: control target
= control target key end

     0   :  { %s1439_s0 = inlined_call_operand.hbm [shape: f32[16,32], index: 0, kind: input, shape index: {}]   ;;  %s1440_s1 = inlined_call_operand.hbm [shape: f32[4,8,32], index: 1, kind: input, shape index: {}]   ;;  %s1441_s2 = inlined_call_operand.hbm [shape: f32[4,1,8], index: 2, kind: input, shape index: {}]   ;;  %s1442_s3 = inlined_call_operand.hbm [shape: f32[4,1,128], index: 3, kind: output, shape index: {}]  }
   0x1   :  { %1444 = sst [smem:[#allocation12_spill]] %s1439_s0 }
   0x2   :  { %8 = vsyncpa [#allocation3], 0 }
   0x3   :  { %9 = vsyncpa [#allocation6], 0 }
   0x4   :  { %11 = vsyncpa [#allocation6 + $0x1], 0 }
   0x5   :  { %12 = vsyncpa [#allocation4], 0 }
   0x6   :  { %14 = vsyncpa [#allocation4 + $0x1], 0  ;;  %s1171_s12 = smov 0   ;;  %s1173_s13 = smov 0  }
   0x7   :  { %s1175_s14 = smov 0   ;;  %s1177_s15 = smov 0  }
   0x8 LB: > { %s1192_s16 = sadd.s32 4294967295, %s1144_s15   ;;  %s863_s17 = sadd.s32 4294967294, %s1144_s15   ;;  %s1144_s15 = sphi %s1177_s15, %s1462_s15   ;;  %s1140_s14 = sphi %s1175_s14, %s1461_s14   ;;  %s1136_s13 = sphi %s1173_s13, %s1460_s13   ;;  %s1132_s12 = sphi %s1171_s12, %s1459_s12  }
   0x9   : > { %s1196_s18 = sadd.s32 1, %s1144_s15   ;;  %s48_s19 = sadd.s32 1, %s1140_s14 }
   0xa   : > { %s45_s20 = ssub.s32 %s1144_s15, %s1196_s18  ;;  %p55_p0 = scmp.ne.s32.totalorder %s1140_s14, %s1136_s13 }
   0xb   : > { %p46_p1 = scmp.eq.s32.totalorder %s45_s20, 0  ;;  %p56_p2 = scmp.eq.s32.totalorder %s1144_s15, 0 }
   0xc   : > { %p61_p3 = scmp.ne.s32.totalorder %s1136_s13, %s1132_s12  ;;  %p111_p4 = scmp.eq.s32.totalorder %s1192_s16, 3 }
   0xd   : > { %s1208_s21 = scalar_select %p46_p1, %s1140_s14, %s48_s19  }
   0xe   : > { %p1210_p5 = por %p56_p2, %p55_p0  ;;  %p1214_p6 = por %p111_p4, %p55_p0 }
   0xf   : > { %p117_p7 = scmp.eq.s32.totalorder %s863_s17, 3  ;;  %p908_p8 = scmp.lt.s32.totalorder %s1144_s15, 4 }
  0x10   : > { %s151_s25 = sand.u32 1, %s1144_s15   ;;  %s153_s26 = sand.u32 1, %s1140_s14  }
  0x11   : > { %p1222_p9 = por %p117_p7, %p61_p3  ;;  %s867_s27 = sshll.u32 %s153_s26, 3 }
  0x12   : > { %s868_s28 = sshll.u32 %s1144_s15, 3  ;;  %s155_s6 = scalar_lea.vmem [#allocation5], %s867_s27 }
  0x13   : > { %s159_s4 = scalar_lea.hbm %s1440_s1, %s868_s28  ;;  %s163_s7 = sshll.u32 %s155_s6, 4  ;;  %s164_s7 = int_to_ptr.vmem [resolvable:$true] %s163_s7 }
  0x14   : > { %s161_s5 = sshll.u32 %s159_s4, 4  ;;  %p1236_p10 = pnand %p908_p8, %p1210_p5  ;;  %s162_s5 = int_to_ptr.hbm [resolvable:$true] %s161_s5 }
  0x15   : > { %p1443_p11 = scmp.eq.s32.totalorder %s1192_s16, 0  ;;  %p864_p12 = scmp.ge.s32.totalorder %s1144_s15, 1 }
  0x16   : > { %p124_p13 = scmp.lt.s32.totalorder %s1144_s15, 5  ;;  %s1252_s10 = scalar_lea.sflag [#allocation6], %s151_s25 }
  0x17   : > { %p1248_p0 = por %p1443_p11, %p61_p3  ;;  %s984_s11 = sshra.s32 %s162_s5, 4  ;;  %s985_s11 = int_to_ptr.hbm [resolvable:$true] %s984_s11 }
  0x18   : > { %s986_s17 = scalar_lea.hbm %s985_s11, 8  ;;  %p988_p2 = pneg %p1236_p10 }
  0x19   : > { %p987_p1 = scmp.ne.s32.totalorder %s985_s11, %s986_s17  ;;  %s991_s22 = scalar_lea.hbm %s1440_s1, 32 }
  0x1a   : > { %p992_p3 = scmp.lt.s32.totalorder %s985_s11, %s1440_s1  ;;  %p993_p7 = scmp.lt.s32.totalorder %s991_s22, %s986_s17 }
  0x1b   : > { %p989_p4 = pnand %p988_p2, %p987_p1 }
  0x1c   : > { %p994_p8 = por %p993_p7, %p992_p3 }
  0x1d   : > { %p990_p5 = pneg %p989_p4 }
  0x1f   : > { %p995_p11 = pnand %p994_p8, %p990_p5 }
  0x21   : > { %998 = shalt.err (!%p995_p11)
}
  0x22   : > { %899 = dma.hbm_to_vmem [thread:$0]  (!%p1236_p10), %s162_s5, 128, %s164_s7, %s1252_s10  }
  0x23   : > { %p1272_p1 = pnand %p864_p12, %p124_p13  ;;  %s1451_s0 = sld [smem:[#allocation12_spill]] }
  0x24   : > { %s1146_s6 = smov [#allocation2]   ;;  %p1452_p4 = scmp.eq.s32.totalorder %s1192_s16, 0 }
  0x25   : > { %p892_p11 = pneg %p1272_p1  ;;  %s137_s11 = sshll.u32 %s1146_s6, 4  ;;  %s138_s11 = int_to_ptr.vmem [resolvable:$true] %s137_s11 }
  0x26   : > { %s176_s17 = scalar_lea.hbm %s1441_s2, %s1144_s15  ;;  %s1147_s20 = smov 128  }
  0x27   : > { %p893_p5 = pnand %p892_p11, %p1452_p4  ;;  %s178_s19 = sshll.u32 %s176_s17, 4  ;;  %s179_s19 = int_to_ptr.hbm [resolvable:$true] %s178_s19 }
  0x28   : > { %s1148_s22 = smov 8   ;;  %s173_s27 = scalar_lea.vmem [#allocation7], %s153_s26 }
  0x29   : > { %s135_s4 = sshll.u32 %s1451_s0, 4  ;;  %s180_s28 = sshll.u32 %s173_s27, 4  ;;  %s136_s4 = int_to_ptr.hbm [resolvable:$true] %s135_s4  ;;  %s181_s28 = int_to_ptr.vmem [resolvable:$true] %s180_s28 }
  0x2a   : > { %895 = dma.hbm_to_vmem [thread:$0]  (!%p893_p5), %s136_s4, 256, %s138_s11, [#allocation3], %s1147_s20, %s1147_s20, %s1148_s22  }
  0x2b   : > { %s1044_s29 = sshra.s32 %s179_s19, 4  ;;  %s1051_s7 = scalar_lea.hbm %s1441_s2, 4  ;;  %s1045_s29 = int_to_ptr.hbm [resolvable:$true] %s1044_s29 }
  0x2c   : > { %s1046_s30 = scalar_lea.hbm %s1045_s29, 1  ;;  %p1052_p7 = scmp.lt.s32.totalorder %s1045_s29, %s1441_s2 }
  0x2d   : > { %p1047_p12 = scmp.ne.s32.totalorder %s1045_s29, %s1046_s30  ;;  %p1053_p8 = scmp.lt.s32.totalorder %s1051_s7, %s1046_s30 }
  0x2f   : > { %p1049_p13 = pnand %p1047_p12, %p988_p2  ;;  %p1054_p11 = por %p1053_p8, %p1052_p7 }
  0x31   : > { %p1050_p3 = pneg %p1049_p13 }
  0x33   : > { %p1055_p4 = pnand %p1054_p11, %p1050_p3 }
  0x35   : > { %1058 = shalt.err (!%p1055_p4)
}
  0x36   : > { %902 = dma.hbm_to_vmem [thread:$0]  (!%p1236_p10), %s179_s19, 16, %s181_s28, %s1252_s10  }
  0x37   : > { %189 = sbr.rel (%p1272_p1) target bundleno = 758 (0x2f6), region = 32  ;;  %p1453_p2 = scmp.eq.s32.totalorder (!%p1272_p1), %s1192_s16, 0 }
  0x3c   : > { %1119 = dma.done.wait (%p1453_p2), [#allocation3], 256   ;;  %p1454_p5 = pmov %p1453_p2 }
  0x3d   : > { %s196_s0 = sand.u32 1, %s1192_s16   ;;  %s1309_s26 = sand.u32 1, %s1136_s13  }
  0x3e   : > { %1121 = vsyncadd (%p1454_p5), [#allocation3], 4294967040  ;;  %s871_s4 = sshll.u32 %s1309_s26, 3  ;;  %s197_s8 = scalar_lea.sflag [#allocation6], %s196_s0 }
  0x3f   : > { %s200_s11 = scalar_lea.vmem [#allocation5], %s871_s4 }
  0x40   : > { %1123 = dma.done.wait (%p1248_p0), %s197_s8, 144  }
  0x41   : > { %1125 = vsyncadd (%p1248_p0), %s197_s8, 4294967152  ;;  %vm241_vm0 = vcmask 261120   ;;  %v238_v0 = vld [vmem:[%s200_s11] sm:$0xff]  ;;  %v237_v1 = vld [vmem:[#allocation2 + $0x8] sm:$0xff]  ;;  %v512_v33 = vlaneseq  ;;  %s209_s9 = scalar_lea.vmem [#allocation7], %s1309_s26  ;;  %vm572_vm4 = vcmask 64512   ;;  %s765_s22 = scalar_lea.hbm %s1442_s3, %s1192_s16 }
  0x42   : > { %v236_v2 = vld [vmem:[#allocation2] sm:$0xff]  ;;  %v332_v3 = vsel %vm241_vm0, %v238_v0, 0  ;;  %v329_v4 = vsel %vm241_vm0, %v237_v1, 0  ;;  %v321_v10 = vmul.f32 %v238_v0, %v238_v0  ;;  %v269_v11 = vmul.f32 %v237_v1, %v237_v1  ;;  %s235_s27 = scalar_lea.vmem [#allocation8], %s1309_s26  ;;  %s769_s29 = sshll.u32 %s765_s22, 4  ;;  %s770_s29 = int_to_ptr.hbm [resolvable:$true] %s769_s29 }
  0x43   : > { %v1318_v5 = vmul.f32 %v237_v1, %v236_v2  ;;  %v326_v6 = vsel %vm241_vm0, %v236_v2, 0  ;;  %v349_v7 = vand.u32 4294901760, %v332_v3  ;;  %v359_v8 = vand.u32 4294901760, %v329_v4  ;;  %s767_s28 = sshll.u32 %s235_s27, 4  ;;  %s757_s30 = scalar_lea.sflag [#allocation4], %s1309_s26  ;;  %s768_s28 = int_to_ptr.vmem [resolvable:$true] %s767_s28 }
  0x44   : > { %v351_v9 = vand.u32 4294901760, %v326_v6  ;;  %v322_v15 = vsel %vm241_vm0, %v321_v10, 0.0  ;;  %v1323_v16 = vsel %vm241_vm0, %v269_v11, 0.0  ;;  %v249_v23 = vmul.f32 %v236_v2, %v236_v2  ;;  %v239_v2 = vld [vmem:[%s209_s9] sm:$0x1]  ;;  %s1088_s6 = sshra.s32 %s770_s29, 4  ;;  %s1089_s6 = int_to_ptr.hbm [resolvable:$true] %s1088_s6 }
  0x45   : > { %876 = vmatpush.xpose.msra.mxu2 %v349_v7  ;;  %v360_v12 = vsub.f32 %v329_v4, %v359_v8  ;;  %v384_v13 = vsub.f32 %v332_v3, %v349_v7  ;;  %350 = vmatpush.xpose.msra.mxu0 %v349_v7  ;;  %v513_v36 = vand.u32 127, %v512_v33  ;;  %vm560_vm1 = vcmp.eq.f32.partialorder %v239_v2, 1.0  ;;  %s1090_s5 = scalar_lea.hbm %s1089_s6, 1  ;;  %s1094_s16 = scalar_lea.hbm %s1442_s3, 4 }
  0x46   : > { %v352_v14 = vsub.f32 %v326_v6, %v351_v9  ;;  %323 = vadd.xlane.f32.xlu0 %v322_v15  ;;  %319 = vadd.xlane.f32.xlu1 %v1323_v16  ;;  %v1327_v27 = vsel %vm241_vm0, %v249_v23, 0.0  ;;  %p1091_p10 = scmp.ne.s32.totalorder %s1089_s6, %s1090_s5  ;;  %p1095_p12 = scmp.lt.s32.totalorder %s1089_s6, %s1442_s3 }
  0x47   : > { %v361_v17 = vand.u32 4294901760, %v360_v12  ;;  %v385_v18 = vand.u32 4294901760, %v384_v13  ;;  %p1096_p13 = scmp.lt.s32.totalorder %s1094_s16, %s1090_s5 }
  0x48   : > { %v353_v19 = vand.u32 4294901760, %v352_v14  ;;  %p1092_p0 = pnand %p1091_p10, %p1214_p6 }
  0x49   : > { %415 = vmatpush.xpose.msrb.mxu2 %v384_v13  ;;  %v362_v20 = vsub.f32 %v360_v12, %v361_v17  ;;  %v386_v21 = vsub.f32 %v384_v13, %v385_v18  ;;  %475 = vmatpush.xpose.msrb.mxu0 %v385_v18  ;;  %p1097_p3 = por %p1096_p13, %p1095_p12 }
  0x4a   : > { %v354_v22 = vsub.f32 %v352_v14, %v353_v19  ;;  %p1093_p1 = pneg %p1092_p0 }
  0x4b   : > { %v363_v24 = vand.u32 4294901760, %v362_v20  ;;  %v387_v25 = vand.u32 4294901760, %v386_v21 }
  0x4c   : > { %v355_v26 = vand.u32 4294901760, %v354_v22  ;;  %p1098_p7 = pnand %p1097_p3, %p1093_p1 }
  0x4d   : > { %364 = vmatmul.f32.vlgmr.msra.gmra.mxu2 %v363_v24  ;;  %877 = vmatpush.xpose.msra.mxu3 %v387_v25 }
  0x4e   : > { %388 = vmatpush.xpose.msra.mxu1 %v387_v25  ;;  %356 = vmatmul.f32.vlgmr.msra.gmra.mxu0 %v355_v26 }
  0x4f   : > { %317 = vadd.xlane.f32.xlu0 %v1327_v27 }
  0x50   : > { %394 = vmatmul.f32.vlgmr.msra.gmra.mxu3 %v359_v8 }
  0x51   : > { %443 = vmatpush.xpose.msrb.mxu3 %v349_v7  ;;  %390 = vmatmul.f32.vlgmr.msra.gmra.mxu1 %v351_v9 }
  0x52   : > { %501 = vmatpush.xpose.msrb.mxu1 %v349_v7 }
  0x55   : > { %418 = vmatmul.f32.vlgmr.msrb.gmra.mxu2 %v352_v14 }
  0x56   : > { %477 = vmatmul.f32.vlgmr.msrb.gmra.mxu0 %v351_v9 }
  0x58   : > { %447 = vmatmul.f32.vlgmr.msrb.gmra.mxu3 %v353_v19  ;;  %v563_v19 = vsub.f32 1.0, %v239_v2 }
  0x59   : > { %503 = vmatmul.f32.vlgmr.msrb.gmra.mxu1 %v351_v9 }
  0x5a   : > { %vm564_vm5 = vcmp.eq.f32.partialorder %v563_v19, 1.0 }
  0x5d   : > { %423 = vmatmul.f32.gmra.mxu2 %v360_v12 }
  0x5e   : > { %481 = vmatmul.f32.gmra.mxu0 %v359_v8 }
  0x60   : > { %453 = vmatmul.f32.gmra.mxu3 %v361_v17 }
  0x61   : > { %507 = vmatmul.f32.gmra.mxu1 %v359_v8  ;;  %v1149_v8 = vmov 0.0  }
  0x62   : > { %v872_v9 = vsel %vm560_vm1, 1.0, %v1149_v8 }
  0x63   : > { %v568_v13 = vperm.slane %v872_v9, 0  ;;  %v251_v9 = vrot.slane %v1327_v27, 4 }
  0xb9   : > { %v324_v32 = vpop.xlane.xlu0 %323  ;;  %v320_v58 = vpop.xlane.xlu1 %319 }
  0xba   : > { %v514_v41 = vperm.slane %v324_v32, %v513_v36 }
  0xbc   : > { %v529_v60 = vadd.f32 %v514_v41, %v320_v58 }
  0xc2   : > { %v318_v43 = vpop.xlane.xlu0 %317 }
  0xc3   : > { %v528_v48 = vadd.f32 %v514_v41, %v318_v43 }
  0xcb   : > { %v357_v28 = vpop.f32.mrf.mxu0 }
  0xce   : > { %v391_v30 = vpop.f32.mrf.mxu1 }
  0xcf   : > { %v392_v34 = vadd.f32 %v391_v30, %v357_v28  ;;  %v873_v28 = vsel %vm564_vm5, 1.0, %v1149_v8 }
  0xd0   : > { %v365_v29 = vpop.f32.mrf.mxu2  ;;  %v636_v33 = vperm.slane %v873_v28, 0 }
  0xd3   : > { %v395_v31 = vpop.f32.mrf.mxu3  ;;  %v478_v38 = vpop.f32.mrf.mxu0 }
  0xd4   : > { %v396_v45 = vadd.f32 %v395_v31, %v365_v29 }
  0xd6   : > { %v504_v40 = vpop.f32.mrf.mxu1 }
  0xd8   : > { %v419_v35 = vpop.f32.mrf.mxu2 }
  0xd9   : > { %v420_v37 = vadd.f32 %v419_v35, %v392_v34 }
  0xdb   : > { %v448_v39 = vpop.f32.mrf.mxu3  ;;  %v482_v52 = vpop.f32.mrf.mxu0 }
  0xdc   : > { %v449_v42 = vadd.f32 %v448_v39, %v420_v37 }
  0xde   : > { %v479_v44 = vadd.f32 %v478_v38, %v449_v42  ;;  %v508_v55 = vpop.f32.mrf.mxu1 }
  0xe0   : > { %v505_v46 = vadd.f32 %v504_v40, %v479_v44  ;;  %v424_v47 = vpop.f32.mrf.mxu2 }
  0xe1   : > { %v425_v49 = vadd.f32 %v424_v47, %v396_v45 }
  0xe2   : > { %v530_v50 = vmul.f32 2.0, %v505_v46 }
  0xe3   : > { %v454_v51 = vpop.f32.mrf.mxu3 }
  0xe4   : > { %v532_v53 = vsub.f32 %v528_v48, %v530_v50  ;;  %v455_v54 = vadd.f32 %v454_v51, %v425_v49 }
  0xe6   : > { %v534_v56 = vmax.f32 %v532_v53, 1e-12  ;;  %v483_v57 = vadd.f32 %v482_v52, %v455_v54 }
  0xe8   : > { %948 = vrsqrt.f32 %v534_v56  ;;  %v509_v59 = vadd.f32 %v508_v55, %v483_v57  ;;  %vm543_vm2 = vcmp.eq.f32.partialorder %v534_v56, inf  ;;  %v546_v15 = vand.u32 2147483648, %v534_v56 }
  0xe9   : > { %vm545_vm3 = vcmp.eq.f32.partialorder %v534_v56, 0.0 }
  0xea   : > { %v531_v61 = vmul.f32 2.0, %v509_v59 }
  0xec   : > { %v533_v62 = vsub.f32 %v529_v60, %v531_v61 }
  0xee   : > { %v949_v63 = vpop.eup %948  ;;  %v535_v0 = vmax.f32 %v533_v62, 1e-12 }
  0xef   : > { %v537_v1 = vmul.f32 %v949_v63, %v534_v56 }
  0xf0   : > { %950 = vrsqrt.f32 %v535_v0  ;;  %vm555_vm6 = vcmp.eq.f32.partialorder %v535_v0, inf  ;;  %v558_v26 = vand.u32 2147483648, %v535_v0  ;;  %vm557_vm7 = vcmp.eq.f32.partialorder %v535_v0, 0.0 }
  0xf1   : > { %v538_v3 = vmul.f32 %v949_v63, %v537_v1 }
  0xf3   : > { %v539_v4 = vmul.f32 0.5, %v538_v3 }
  0xf5   : > { %v540_v6 = vsub.f32 1.5, %v539_v4 }
  0xf6   : > { %v951_v7 = vpop.eup %950 }
  0xf7   : > { %v541_v10 = vmul.f32 %v949_v63, %v540_v6  ;;  %v549_v11 = vmul.f32 %v951_v7, %v535_v0 }
  0xf9   : > { %v542_v12 = vmul.f32 %v541_v10, %v534_v56  ;;  %v550_v14 = vmul.f32 %v951_v7, %v549_v11  ;;  %v271_v10 = vrot.slane %v1323_v16, 4  ;;  %v252_v11 = vadd.f32 %v251_v9, %v1327_v27 }
  0xfb   : > { %v544_v17 = vsel %vm543_vm2, %v534_v56, %v542_v12  ;;  %v551_v18 = vmul.f32 0.5, %v550_v14  ;;  %v272_v12 = vadd.f32 %v271_v10, %v1323_v16 }
  0xfc   : > { %v547_v20 = vsel %vm545_vm3, %v546_v15, %v544_v17 }
  0xfd   : > { %v570_v21 = vmul.f32 %v568_v13, %v547_v20  ;;  %v552_v22 = vsub.f32 1.5, %v551_v18  ;;  %v633_v36 = vmul.f32 -1.0, %v547_v20  ;;  %v273_v14 = vrot.slane %v272_v12, 2 }
  0xff   : > { %v573_v23 = vsel %vm572_vm4, %v570_v21, -inf  ;;  %v553_v24 = vmul.f32 %v951_v7, %v552_v22  ;;  %v638_v38 = vmul.f32 %v636_v33, %v633_v36  ;;  %v274_v17 = vadd.f32 %v273_v14, %v272_v12 }
 0x100   : > { %574 = vmax.xlane.f32.xlu1 %v573_v23 }
 0x101   : > { %v554_v25 = vmul.f32 %v553_v24, %v535_v0  ;;  %v640_v39 = vsel %vm572_vm4, %v638_v38, -inf  ;;  %v275_v21 = vrot.slane %v274_v17, 1 }
 0x103   : > { %v556_v29 = vsel %vm555_vm6, %v535_v0, %v554_v25  ;;  %v1352_v23 = vadd.f32 %v275_v21, %v274_v17 }
 0x104   : > { %v559_v30 = vsel %vm557_vm7, %v558_v26, %v556_v29 }
 0x105   : > { %v571_v31 = vmul.f32 %v568_v13, %v559_v30  ;;  %v634_v32 = vmul.f32 -1.0, %v559_v30 }
 0x107   : > { %v576_v34 = vsel %vm572_vm4, %v571_v31, -inf  ;;  %v639_v35 = vmul.f32 %v636_v33, %v634_v32 }
 0x108   : > { %577 = vmax.xlane.f32.xlu2 %v576_v34 }
 0x109   : > { %v643_v37 = vsel %vm572_vm4, %v639_v35, -inf }
 0x10a   : > { %644 = vmax.xlane.f32.xlu0 %v643_v37 }
 0x110   : > { %641 = vmax.xlane.f32.xlu2 %v640_v39 }
 0x173   : > { %v575_v40 = vpop.xlane.xlu1 %574 }
 0x174   : > { %v579_v41 = vsub.f32 %v547_v20, %v575_v40 }
 0x176   : > { %v581_v42 = vmul.f32 1.442695, %v579_v41 }
 0x178   : > { %952 = vpow2.f32 %v581_v42 }
 0x17b   : > { %v578_v43 = vpop.xlane.xlu2 %577 }
 0x17c   : > { %v580_v44 = vsub.f32 %v559_v30, %v578_v43 }
 0x17d   : > { %v645_v45 = vpop.xlane.xlu0 %644 }
 0x17e   : > { %v953_v46 = vpop.eup %952  ;;  %v583_v47 = vmul.f32 1.442695, %v580_v44  ;;  %v647_v48 = vsub.f32 %v634_v32, %v645_v45 }
 0x17f   : > { %v585_v49 = vmul.f32 %v953_v46, %v568_v13 }
 0x180   : > { %954 = vpow2.f32 %v583_v47  ;;  %v650_v50 = vmul.f32 1.442695, %v647_v48 }
 0x181   : > { %v587_v51 = vsel %vm572_vm4, %v585_v49, 0.0  ;;  %v595_v61 = vmul.f32 %v585_v49, %v547_v20 }
 0x182   : > { %956 = vpow2.f32 %v650_v50  ;;  %588 = vadd.xlane.f32.xlu1 %v587_v51 }
 0x183   : > { %v642_v52 = vpop.xlane.xlu2 %641  ;;  %v597_v1 = vsel %vm572_vm4, %v595_v61, 0.0 }
 0x184   : > { %v646_v53 = vsub.f32 %v633_v36, %v642_v52 }
 0x186   : > { %v955_v54 = vpop.eup %954  ;;  %v648_v55 = vmul.f32 1.442695, %v646_v53 }
 0x187   : > { %v586_v56 = vmul.f32 %v955_v54, %v568_v13  ;;  %v253_v13 = vrot.slane %v252_v11, 2 }
 0x188   : > { %v957_v57 = vpop.eup %956  ;;  %958 = vpow2.f32 %v648_v55 }
 0x189   : > { %v590_v58 = vsel %vm572_vm4, %v586_v56, 0.0  ;;  %v653_v59 = vmul.f32 %v957_v57, %v636_v33  ;;  %v596_v4 = vmul.f32 %v586_v56, %v559_v30  ;;  %v254_v15 = vadd.f32 %v253_v13, %v252_v11 }
 0x18a   : > { %591 = vadd.xlane.f32.xlu2 %v590_v58 }
 0x18b   : > { %v657_v60 = vsel %vm572_vm4, %v653_v59, 0.0  ;;  %v663_v6 = vmul.f32 %v653_v59, %v559_v30  ;;  %v600_v7 = vsel %vm572_vm4, %v596_v4, 0.0 }
 0x18c   : > { %658 = vadd.xlane.f32.xlu1 %v657_v60 }
 0x18d   : > { %v667_v8 = vsel %vm572_vm4, %v663_v6, 0.0 }
 0x18e   : > { %v959_v62 = vpop.eup %958 }
 0x18f   : > { %v652_v63 = vmul.f32 %v959_v62, %v636_v33 }
 0x191   : > { %v654_v0 = vsel %vm572_vm4, %v652_v63, 0.0  ;;  %v662_v2 = vmul.f32 %v652_v63, %v547_v20  ;;  %v255_v20 = vrot.slane %v254_v15, 1 }
 0x192   : > { %655 = vadd.xlane.f32.xlu0 %v654_v0  ;;  %598 = vadd.xlane.f32.xlu2 %v597_v1 }
 0x193   : > { %v664_v3 = vsel %vm572_vm4, %v662_v2, 0.0  ;;  %v1350_v22 = vadd.f32 %v255_v20, %v254_v15 }
 0x194   : > { %665 = vadd.xlane.f32.xlu1 %v664_v3 }
 0x19a   : > { %601 = vadd.xlane.f32.xlu0 %v600_v7  ;;  %668 = vadd.xlane.f32.xlu2 %v667_v8 }
 0x1f5   : > { %v589_v18 = vpop.xlane.xlu1 %588 }
 0x1f6   : > { %v1347_v19 = vadd.f32 1e-06, %v589_v18 }
 0x1f8   : > { %960 = vrcp.f32 %v1347_v19  ;;  %v612_v42 = vand.u32 2147483647, %v1347_v19  ;;  %vm608_vm10 = vweird.f32 %v1347_v19  ;;  %v614_v55 = vand.u32 2147483648, %v1347_v19 }
 0x1f9   : > { %962 = vrsqrt.f32 %v1350_v22 }
 0x1fa   : > { %vm1377_vm13 = vcmp.eq.f32.partialorder %v612_v42, 8.507059e+37  ;;  %v615_v2 = vor.u32 1.1754944e-38, %v614_v55 }
 0x1fd   : > { %v592_v24 = vpop.xlane.xlu2 %591 }
 0x1fe   : > { %v1354_v25 = vpop.eup %960  ;;  %v594_v27 = vadd.f32 1e-06, %v592_v24 }
 0x1ff   : > { %v659_v16 = vpop.xlane.xlu1 %658  ;;  %v604_v28 = vmul.f32 %v1354_v25, %v1347_v19  ;;  %v1360_v29 = vpop.eup %962  ;;  %vm609_vm8 = vweird.f32 %v1354_v25 }
 0x200   : > { %964 = vrcp.f32 %v594_v27  ;;  %v661_v26 = vadd.f32 1e-06, %v659_v16  ;;  %v258_v40 = vmul.f32 %v1360_v29, %v1350_v22  ;;  %v627_v45 = vand.u32 2147483647, %v594_v27  ;;  %vm1373_vm12 = vmor %vm608_vm10, %vm609_vm8 }
 0x201   : > { %966 = vrsqrt.f32 %v1352_v23  ;;  %v605_v30 = vsub.f32 1.0, %v604_v28  ;;  %v629_v46 = vand.u32 2147483648, %v594_v27  ;;  %vm623_vm14 = vweird.f32 %v594_v27 }
 0x202   : > { %968 = vrcp.f32 %v661_v26  ;;  %v694_v47 = vand.u32 2147483647, %v661_v26  ;;  %v696_v48 = vand.u32 2147483648, %v661_v26  ;;  %vm690_vm15 = vweird.f32 %v661_v26 }
 0x203   : > { %v606_v38 = vmul.f32 %v1354_v25, %v605_v30  ;;  %v630_v59 = vor.u32 1.1754944e-38, %v629_v46  ;;  %vm628_vm4 = vcmp.eq.f32.partialorder %v627_v45, 8.507059e+37  ;;  %v259_v15 = vmul.f32 %v1360_v29, %v258_v40 }
 0x204   : > { %vm695_vm3 = vcmp.eq.f32.partialorder %v694_v47, 8.507059e+37  ;;  %v697_v60 = vor.u32 1.1754944e-38, %v696_v48  ;;  %vm266_vm10 = vcmp.eq.f32.partialorder %v1350_v22, 0.0 }
 0x205   : > { %v656_v31 = vpop.xlane.xlu0 %655  ;;  %v599_v37 = vpop.xlane.xlu2 %598  ;;  %v607_v50 = vadd.f32 %v1354_v25, %v606_v38  ;;  %v260_v20 = vmul.f32 0.5, %v259_v15 }
 0x206   : > { %v965_v32 = vpop.eup %964  ;;  %v660_v33 = vadd.f32 1e-06, %v656_v31  ;;  %v242_v31 = vsel %vm241_vm0, %v1318_v5, 0.0  ;;  %v287_v5 = vand.u32 2147483648, %v1352_v23 }
 0x207   : > { %v1362_v34 = vpop.eup %966  ;;  %v619_v35 = vmul.f32 %v965_v32, %v594_v27  ;;  %vm624_vm9 = vweird.f32 %v965_v32  ;;  %v611_v62 = vsel %vm1373_vm12, %v1354_v25, %v607_v50  ;;  %v666_v25 = vpop.xlane.xlu1 %665  ;;  %v261_v28 = vsub.f32 1.5, %v260_v20 }
 0x208   : > { %v969_v36 = vpop.eup %968  ;;  %970 = vrcp.f32 %v660_v33  ;;  %v278_v41 = vmul.f32 %v1362_v34, %v1352_v23  ;;  %vm625_vm1 = vmor %vm623_vm14, %vm624_vm9  ;;  %v679_v3 = vand.u32 2147483647, %v660_v33  ;;  %v681_v4 = vand.u32 2147483648, %v660_v33 }
 0x209   : > { %v686_v39 = vmul.f32 %v969_v36, %v661_v26  ;;  %v620_v43 = vsub.f32 1.0, %v619_v35  ;;  %vm691_vm11 = vweird.f32 %v969_v36  ;;  %v616_v12 = vsel %vm1377_vm13, %v615_v2, %v611_v62 }
 0x20a   : > { %vm692_vm2 = vmor %vm690_vm15, %vm691_vm11  ;;  %vm675_vm6 = vweird.f32 %v660_v33  ;;  %vm680_vm8 = vcmp.eq.f32.partialorder %v679_v3, 8.507059e+37  ;;  %v682_v17 = vor.u32 1.1754944e-38, %v681_v4  ;;  %v279_v21 = vmul.f32 %v1362_v34, %v278_v41 }
 0x20b   : > { %v687_v44 = vsub.f32 1.0, %v686_v39  ;;  %v621_v49 = vmul.f32 %v965_v32, %v620_v43  ;;  %v617_v24 = vmul.f32 %v616_v12, %v599_v37  ;;  %vm264_vm9 = vcmp.eq.f32.partialorder %v1350_v22, inf }
 0x20c   : > { %v280_v30 = vmul.f32 0.5, %v279_v21  ;;  %v243_v40 = vrot.slane %v242_v31, 4  ;;  %vm284_vm11 = vcmp.eq.f32.partialorder %v1352_v23, inf  ;;  %vm286_vm12 = vcmp.eq.f32.partialorder %v1352_v23, 0.0 }
 0x20d   : > { %v688_v51 = vmul.f32 %v969_v36, %v687_v44  ;;  %v622_v56 = vadd.f32 %v965_v32, %v621_v49  ;;  %v669_v6 = vpop.xlane.xlu2 %668  ;;  %v602_v8 = vpop.xlane.xlu0 %601  ;;  %vm726_vm13 = vcmask 7168  }
 0x20e   : > { %v971_v52 = vpop.eup %970  ;;  %v281_v35 = vsub.f32 1.5, %v280_v30  ;;  %v244_v48 = vadd.f32 %v243_v40, %v242_v31 }
 0x20f   : > { %v671_v57 = vmul.f32 %v971_v52, %v660_v33  ;;  %v689_v58 = vadd.f32 %v969_v36, %v688_v51  ;;  %v626_v61 = vsel %vm625_vm1, %v965_v32, %v622_v56  ;;  %vm676_vm5 = vweird.f32 %v971_v52 }
 0x210   : > { %v631_v1 = vsel %vm628_vm4, %v630_v59, %v626_v61  ;;  %vm677_vm7 = vmor %vm675_vm6, %vm676_vm5  ;;  %v262_v33 = vmul.f32 %v1360_v29, %v261_v28  ;;  %v282_v39 = vmul.f32 %v1362_v34, %v281_v35  ;;  %v245_v53 = vrot.slane %v244_v48, 2 }
 0x211   : > { %v672_v63 = vsub.f32 1.0, %v671_v57  ;;  %v693_v0 = vsel %vm692_vm2, %v969_v36, %v689_v58  ;;  %v632_v11 = vmul.f32 %v631_v1, %v602_v8  ;;  %v267_v36 = vand.u32 2147483648, %v1350_v22 }
 0x212   : > { %v698_v7 = vsel %vm695_vm3, %v697_v60, %v693_v0  ;;  %v263_v37 = vmul.f32 %v262_v33, %v1350_v22  ;;  %v283_v42 = vmul.f32 %v282_v39, %v1352_v23 }
 0x213   : > { %v673_v9 = vmul.f32 %v971_v52, %v672_v63  ;;  %v699_v10 = vmul.f32 %v698_v7, %v669_v6 }
 0x214   : > { %v265_v29 = vsel %vm264_vm9, %v1350_v22, %v263_v37  ;;  %v285_v45 = vsel %vm284_vm11, %v1352_v23, %v283_v42  ;;  %v246_v23 = vadd.f32 %v245_v53, %v244_v48 }
 0x215   : > { %v674_v13 = vadd.f32 %v971_v52, %v673_v9  ;;  %v701_v14 = vsub.f32 %v699_v10, %v632_v11  ;;  %v268_v43 = vsel %vm266_vm10, %v267_v36, %v265_v29  ;;  %v288_v47 = vsel %vm286_vm12, %v287_v5, %v285_v45 }
 0x216   : > { %v289_v49 = vmul.f32 %v288_v47, %v268_v43  ;;  %v247_v1 = vrot.slane %v246_v23, 1 }
 0x217   : > { %v678_v18 = vsel %vm677_vm7, %v971_v52, %v674_v13  ;;  %v703_v19 = vmul.f32 -1.0, %v701_v14 }
 0x218   : > { %v683_v27 = vsel %vm680_vm8, %v682_v17, %v678_v18  ;;  %v290_v50 = vmax.f32 %v289_v49, 1e-08  ;;  %v248_v13 = vadd.f32 %v247_v1, %v246_v23 }
 0x219   : > { %v684_v16 = vmul.f32 %v683_v27, %v666_v25  ;;  %v706_v26 = vmul.f32 1.442695, %v703_v19 }
 0x21a   : > { %v302_v2 = vand.u32 2147483648, %v290_v50  ;;  %vm296_vm15 = vweird.f32 %v290_v50  ;;  %v300_v6 = vand.u32 2147483647, %v290_v50 }
 0x21b   : > { %v700_v32 = vsub.f32 %v684_v16, %v617_v24  ;;  %972 = vpow2.f32 %v706_v26 }
 0x21c   : > { %v303_v11 = vor.u32 1.1754944e-38, %v302_v2  ;;  %vm301_vm4 = vcmp.eq.f32.partialorder %v300_v6, 8.507059e+37 }
 0x21d   : > { %v702_v38 = vmul.f32 -1.0, %v700_v32 }
 0x21f   : > { %v704_v41 = vmul.f32 1.442695, %v702_v38  ;;  %v1150_v38 = vmov 8.0  }
 0x221   : > { %v973_v44 = vpop.eup %972  ;;  %974 = vpow2.f32 %v704_v41 }
 0x222   : > { %v717_v46 = vadd.f32 1.0, %v973_v44  ;;  %v720_v34 = vmul.f32 -0.5, %v973_v44  ;;  %v723_v22 = vand.u32 2147483647, %v973_v44 }
 0x224   : > { %976 = vlog2.f32 %v717_v46  ;;  %v721_v52 = vadd.f32 1.0, %v720_v34  ;;  %vm724_vm14 = vcmp.lt.f32.partialorder %v723_v22, 0.0004427343 }
 0x225   : > { %978 = vrcp.f32 %v290_v50 }
 0x226   : > { %v722_v58 = vmul.f32 %v973_v44, %v721_v52 }
 0x227   : > { %v975_v51 = vpop.eup %974 }
 0x228   : > { %v708_v54 = vadd.f32 1.0, %v975_v51  ;;  %v711_v55 = vmul.f32 -0.5, %v975_v51  ;;  %v714_v63 = vand.u32 2147483647, %v975_v51 }
 0x22a   : > { %v977_v56 = vpop.eup %976  ;;  %980 = vlog2.f32 %v708_v54  ;;  %v712_v61 = vadd.f32 1.0, %v711_v55  ;;  %vm715_vm2 = vcmp.lt.f32.partialorder %v714_v63, 0.0004427343 }
 0x22b   : > { %v719_v57 = vmul.f32 0.6931472, %v977_v56  ;;  %v979_v59 = vpop.eup %978  ;;  %982 = vrcp.f32 %v1150_v38 }
 0x22c   : > { %v292_v0 = vmul.f32 %v979_v59, %v290_v50  ;;  %vm297_vm1 = vweird.f32 %v979_v59  ;;  %v713_v8 = vmul.f32 %v975_v51, %v712_v61 }
 0x22d   : > { %v725_v60 = vsel %vm724_vm14, %v722_v58, %v719_v57  ;;  %vm298_vm3 = vmor %vm296_vm15, %vm297_vm1 }
 0x22e   : > { %v739_v62 = vsel %vm726_vm13, %v725_v60, 0.0  ;;  %v293_v4 = vsub.f32 1.0, %v292_v0 }
 0x22f   : > { %740 = vadd.xlane.f32.xlu1 %v739_v62 }
 0x230   : > { %v981_v3 = vpop.eup %980  ;;  %v294_v9 = vmul.f32 %v979_v59, %v293_v4 }
 0x231   : > { %v710_v7 = vmul.f32 0.6931472, %v981_v3  ;;  %v983_v37 = vpop.eup %982 }
 0x232   : > { %v295_v14 = vadd.f32 %v979_v59, %v294_v9  ;;  %v310_v39 = vmul.f32 8.0, %v983_v37 }
 0x233   : > { %v716_v10 = vsel %vm715_vm2, %v713_v8, %v710_v7 }
 0x234   : > { %v727_v12 = vsel %vm726_vm13, %v716_v10, 0.0  ;;  %v299_v15 = vsel %vm298_vm3, %v979_v59, %v295_v14  ;;  %v311_v40 = vsub.f32 1.0, %v310_v39 }
 0x235   : > { %728 = vadd.xlane.f32.xlu0 %v727_v12  ;;  %v304_v17 = vsel %vm301_vm4, %v303_v11, %v299_v15 }
 0x236   : > { %v305_v18 = vmul.f32 %v304_v17, %v248_v13  ;;  %v312_v5 = vmul.f32 %v983_v37, %v311_v40 }
 0x238   : > { %v306_v19 = vsel %vm241_vm0, %v305_v18, 0.0  ;;  %v313_v41 = vadd.f32 %v983_v37, %v312_v5  ;;  %vm314_vm0 = vweird.f32 %v983_v37 }
 0x239   : > { %307 = vadd.xlane.f32.xlu2 %v306_v19 }
 0x23a   : > { %v315_v29 = vsel %vm314_vm0, %v983_v37, %v313_v41 }
 0x2a2   : > { %v741_v20 = vpop.xlane.xlu1 %740 }
 0x2a3   : > { %v742_v21 = vrot.slane %v741_v20, 4 }
 0x2a5   : > { %v743_v24 = vadd.f32 %v742_v21, %v741_v20 }
 0x2a7   : > { %v744_v25 = vrot.slane %v743_v24, 2 }
 0x2a8   : > { %v729_v27 = vpop.xlane.xlu0 %728 }
 0x2a9   : > { %v730_v16 = vrot.slane %v729_v27, 4  ;;  %v745_v28 = vadd.f32 %v744_v25, %v743_v24 }
 0x2ab   : > { %v731_v26 = vadd.f32 %v730_v16, %v729_v27  ;;  %v746_v32 = vrot.slane %v745_v28, 1 }
 0x2ac   : > { %v308_v42 = vpop.xlane.xlu2 %307 }
 0x2ad   : > { %v732_v30 = vrot.slane %v731_v26, 2  ;;  %v747_v36 = vadd.f32 %v746_v32, %v745_v28  ;;  %v316_v43 = vmul.f32 %v315_v29, %v308_v42 }
 0x2af   : > { %v733_v31 = vadd.f32 %v732_v30, %v731_v26 }
 0x2b1   : > { %v734_v33 = vrot.slane %v733_v31, 1 }
 0x2b3   : > { %v735_v35 = vadd.f32 %v734_v33, %v733_v31 }
 0x2b5   : > { %878 = vpush %v735_v35 }
 0x2b6   : > { %880 = vpush %v747_v36 }
 0x2e6   : > { %s879_s10 = spop %878 }
 0x2e7   : > { %s881_s25 = spop %880  ;;  %v737_v44 = vstv %s879_s10 }
 0x2e8   : > { %v749_v45 = vstv %s881_s25  ;;  %v738_v47 = vmul.f32 %v737_v44, %v315_v29 }
 0x2e9   : > { %v750_v46 = vmul.f32 %v749_v45, %v315_v29 }
 0x2eb   : > { %v751_v34 = vadd.f32 %v750_v46, %v316_v43 }
 0x2ed   : > { %v752_v48 = vadd.f32 %v751_v34, %v738_v47 }
 0x2ef   : > { %v753_v49 = vmax.f32 %v752_v48, 0.0 }
 0x2f1   : > { %v754_v50 = vmul.f32 0.5, %v753_v49 }
 0x2f3   : > { %755 = vst [vmem:[%s235_s27] sm:$0x1] %v754_v50 }
 0x2f4   : > { %1101 = shalt.err (!%p1098_p7)
}
 0x2f5   : > { %890 = dma.vmem_to_hbm [thread:$0]  (%p1214_p6), %s768_s28, 16, %s770_s29, %s757_s30  }
 0x2f6 PF: > { %p910_p8 = scmp.ge.s32.totalorder %s1144_s15, 2  ;;  %s781_s26 = sand.u32 1, %s1132_s12  }
 0x2f7   : > { %s782_s8 = scalar_lea.sflag [#allocation4], %s781_s26 }
 0x2f8   : > { %p904_p11 = pnand %p910_p8, %p1222_p9 }
 0x2fa   : > { %p905_p4 = pneg %p904_p11 }
 0x2fc   : > { %1127 = dma.done.wait (%p905_p4), %s782_s8, 16  }
 0x2fd   : > { %1129 = vsyncadd (%p905_p4), %s782_s8, 4294967280  ;;  %p17_p2 = scmp.ge.s32.totalorder %s1196_s18, 6   ;;  %s1459_s12 = smov %s1136_s13 }
 0x2fe   : > { %s1460_s13 = smov %s1140_s14  ;;  %s1461_s14 = smov %s1208_s21 }
 0x2ff   : > { %s1462_s15 = smov %s1196_s18  ;;  %19 = sbr.rel (!%p17_p2) target bundleno = 8 (0x8), region = 93 }
 0x304   :  { %787 = vsyncpa [#allocation3], 1 }
 0x305   :  { %789 = vsyncpa [#allocation3 + $0x1], 1 }
 0x306   :  { %790 = vsyncpa [#allocation6], 1 }
 0x307   :  { %792 = vsyncpa [#allocation6 + $0x1], 1 }
 0x308   :  { %793 = vsyncpa [#allocation4], 1 }
 0x309   :  { %795 = vsyncpa [#allocation4 + $0x1], 1 }

</bundles_post_ra>
